<compile_context>
chip_gen: v7x
topology: tpu7x:2x2x1
jax: 0.10.0
libtpu: 0.0.40
codegen_flags: <defaults>
</compile_context>

<pallas_src>
import functools

import jax
import jax.numpy as jnp
from jax.experimental import pallas as pl
from jax.experimental.pallas import tpu as pltpu


def _round_up(n, m):
    return ((n + m - 1) // m) * m


def _cdiv(a, b):
    return (a + b - 1) // b


def _softplus(x):
    # Numerically-stable softplus: max(x, 0) + log1p(exp(-|x|)).
    # The log1p is spelled as a guarded log(1 + e) so the kernel only relies on
    # exp/log primitives; for x < -15 the exact tail exp(x) is returned directly,
    # matching torch / jax.nn.softplus to < 1e-7 absolute everywhere.
    e = jnp.exp(-jnp.abs(x))
    return jnp.maximum(x, 0.0) + jnp.where(x < -15.0, e, jnp.log(1.0 + e))


def _symm_softplus(x):
    return _softplus(x) - 0.5 * x


def make_res_icnn2_forward(dim, dimh, num_hidden_layers, *, symm_act_first=False,
                           b_tile_cap=8192):
    """Builds the fused Pallas forward for ResICNN2 at static (dim, dimh, L).

    Only the module defaults softplus_type='softplus', zero_softplus=False are
    implemented (the other act variants are data-independent swaps of _softplus).
    """
    assert num_hidden_layers > 1, "num_hidden_layers <= 1"
    n_hidden = num_hidden_layers - 1
    dimh_p = _round_up(dimh, 8)                 # sublane-aligned feature rows
    rows_x = (n_hidden + 1) * dimh_p + 8        # fused x-slab rows (+8-row group for WxL)
    row_last = (n_hidden + 1) * dimh_p          # 8-aligned row holding anL_s * WxL
    n_cols = 5 + 5 * n_hidden                   # packed per-channel vector columns
    c_wzl = 3 + 5 * n_hidden                    # column: anL_s * softplus(wzL) / dimh
    c_bias = c_wzl + 1                          # column: row 0 holds anL_s * anL_b

    def kernel(x_ref, wx_ref, vec_ref, wz_ref, out_ref):
        xT = x_ref[...]                          # [dim, Bt]        batch on lanes
        wx = wx_ref[...]                         # [rows_x, dim]    fused x-proj weights
        vecs = vec_ref[...]                      # [dimh_p, n_cols] packed vectors
        wz = wz_ref[...]                         # [2*n_hidden*dimh_p, dimh_p]

        def col(c):                              # [dimh_p, 1] column of the vector slab
            return vecs[:, c:c + 1]

        # Fused projection of x through every Linear(dim, .) layer at once.
        # dim is tiny (2), so broadcast multiply-adds (VPU) beat a K=dim matmul.
        xproj = wx[:, 0:1] * xT[0:1, :]
        for d in range(1, dim):
            xproj = xproj + wx[:, d:d + 1] * xT[d:d + 1, :]          # [rows_x, Bt]

        # z = act(actnorm0(Wz0 x + b0))
        # TODO(synk): ActNormNoLogdet source not in the spec; implemented as the
        # post-init affine y = (x + bias) * exp(log_scale) (CP-Flow convention),
        # without the data-dependent first-batch initialization.
        h = (xproj[0:dimh_p, :] + col(0) + col(2)) * col(1)
        z = _symm_softplus(h) if symm_act_first else _softplus(h)

        # Residual hidden blocks:
        #   z = act(actnorm_i( PosLin2(act(actnorm_in(PosLin1 z))) + z + Wx_i x ))
        # softplus(weight) and the 1/dimh PosLinear gain are pre-folded into the slabs.
        for li in range(n_hidden):
            b = 3 + 5 * li
            wp1 = wz[(2 * li) * dimh_p:(2 * li + 1) * dimh_p, :]
            wp2 = wz[(2 * li + 1) * dimh_p:(2 * li + 2) * dimh_p, :]
            u = jnp.dot(wp1, z, preferred_element_type=jnp.float32)   # MXU
            u = _softplus((u + col(b + 1)) * col(b))
            u = jnp.dot(wp2, u, preferred_element_type=jnp.float32) + col(b + 2)
            r = u + z + xproj[(li + 1) * dimh_p:(li + 2) * dimh_p, :]
            z = _softplus((r + col(b + 4)) * col(b + 3))

        # out = anL_s*PosLinL z + anL_s*WxL x + anL_s*anL_b  (final actnorm folded).
        o = jnp.sum(col(c_wzl) * z, axis=0, keepdims=True) \
            + xproj[row_last:row_last + 1, :] \
            + vecs[0:1, c_bias:c_bias + 1]                            # [1, Bt]
        out_ref[...] = o

    @functools.lru_cache(maxsize=None)
    def build_call(b_pad, b_tile):
        in_specs = [
            pl.BlockSpec((dim, b_tile), lambda i: (0, i)),
            pl.BlockSpec((rows_x, dim), lambda i: (0, 0)),
            pl.BlockSpec((dimh_p, n_cols), lambda i: (0, 0)),
            pl.BlockSpec((2 * n_hidden * dimh_p, dimh_p), lambda i: (0, 0)),
        ]
        return pl.pallas_call(
            kernel,
            out_shape=jax.ShapeDtypeStruct((1, b_pad), jnp.float32),
            grid=(b_pad // b_tile,),
            in_specs=in_specs,
            out_specs=pl.BlockSpec((1, b_tile), lambda i: (0, i)),
            compiler_params=pltpu.CompilerParams(
                dimension_semantics=("parallel",)),
        )

    def forward(x, kernel_params):
        # x: [B, dim] (PyTorch layout); returns [B, 1].
        B = x.shape[0]
        b_ceil = _round_up(max(B, 1), 128)
        # Adaptive batch tile: one tile for small batches (no dead-lane blowup),
        # >=2 balanced large tiles otherwise (amortizes per-step pipeline overhead
        # and lets v7x shard the parallel batch axis across both TensorCores).
        if b_ceil <= 1024:
            n_tiles = 1
        else:
            n_tiles = max(2, _cdiv(b_ceil, b_tile_cap))
        b_tile = _round_up(_cdiv(b_ceil, n_tiles), 128)
        b_pad = n_tiles * b_tile

        xT = jnp.transpose(x.astype(jnp.float32))             # [dim, B]
        xT = jnp.pad(xT, ((0, 0), (0, b_pad - B)))            # lane-dense padded batch
        outT = build_call(b_pad, b_tile)(xT, *kernel_params)  # [1, b_pad]
        return outT[0, :B].reshape(B, 1)

    return forward


def init_raw_params(key, dim, dimh, num_hidden_layers):
    """Deterministic synthetic parameters with the same shapes/roles as the module."""
    n_hidden = num_hidden_layers - 1
    keys = iter(jax.random.split(key, 8 + 8 * n_hidden))

    def rnd(shape, scale):
        return (scale * jax.random.normal(next(keys), shape)).astype(jnp.float32)

    raw = {
        "wz0": rnd((dimh, dim), 0.5),      # nn.Linear(dim, dimh).weight
        "bz0": rnd((dimh,), 0.1),          # nn.Linear(dim, dimh).bias
        "an0_b": rnd((dimh,), 0.1),        # actnorm0 bias
        "an0_logs": rnd((dimh,), 0.1),     # actnorm0 log-scale
        "hidden": [],
        "wzL": rnd((1, dimh), 0.5),        # PosLinear(dimh, 1, bias=False).weight
        "wxL": rnd((1, dim), 0.5),         # nn.Linear(dim, 1, bias=False).weight
        "anL_b": rnd((1,), 0.1),           # actnorms[-1] bias
        "anL_logs": rnd((1,), 0.1),        # actnorms[-1] log-scale
    }
    for _ in range(n_hidden):
        raw["hidden"].append(dict(
            A1=rnd((dimh, dimh), 0.5),     # PosLinear(dimh, dimh, bias=False).weight
            ab_in=rnd((dimh,), 0.1),       # inner ActNormNoLogdet bias
            alogs_in=rnd((dimh,), 0.1),    # inner ActNormNoLogdet log-scale
            A2=rnd((dimh, dimh), 0.5),     # PosLinear(dimh, dimh, bias=True).weight
            b2=rnd((dimh,), 0.1),          # ... .bias
            Wx=rnd((dimh, dim), 0.5),      # nn.Linear(dim, dimh, bias=False).weight
            ab=rnd((dimh,), 0.1),          # actnorms[i] bias
            alogs=rnd((dimh,), 0.1),       # actnorms[i] log-scale
        ))
    return raw


def prepare_kernel_params(raw, dim, dimh):
    """Folds every data-independent transform (softplus(W_pos), 1/dimh PosLinear gain,
    exp(actnorm log-scale), and the whole final actnorm) into THREE packed slabs."""
    sp = jax.nn.softplus
    n_hidden = len(raw["hidden"])
    dimh_p = _round_up(dimh, 8)
    rows_x = (n_hidden + 1) * dimh_p + 8
    row_last = (n_hidden + 1) * dimh_p
    n_cols = 5 + 5 * n_hidden

    anL_s = jnp.exp(jnp.asarray(raw["anL_logs"], jnp.float32)).reshape(())
    anL_b = jnp.asarray(raw["anL_b"], jnp.float32).reshape(())

    def padv(v):
        v = jnp.asarray(v, jnp.float32).reshape(-1)
        return jnp.pad(v, (0, dimh_p - v.shape[0]))

    # --- slab 1: fused x-projection weights (Wz0, every Wx_i, scaled WxL) ------------
    wx_all = jnp.zeros((rows_x, dim), jnp.float32)
    wx_all = wx_all.at[0:dimh, :].set(jnp.asarray(raw["wz0"], jnp.float32))
    for i, h in enumerate(raw["hidden"]):
        r0 = (i + 1) * dimh_p
        wx_all = wx_all.at[r0:r0 + dimh, :].set(jnp.asarray(h["Wx"], jnp.float32))
    wx_all = wx_all.at[row_last:row_last + 1, :].set(
        anL_s * jnp.asarray(raw["wxL"], jnp.float32))

    # --- slab 2: all per-channel vectors as columns ----------------------------------
    cols = [padv(raw["bz0"]),
            padv(jnp.exp(jnp.asarray(raw["an0_logs"], jnp.float32))),
            padv(raw["an0_b"])]
    for h in raw["hidden"]:
        cols += [padv(jnp.exp(jnp.asarray(h["alogs_in"], jnp.float32))),
                 padv(h["ab_in"]),
                 padv(jnp.asarray(h["b2"], jnp.float32) / dimh),
                 padv(jnp.exp(jnp.asarray(h["alogs"], jnp.float32))),
                 padv(h["ab"])]
    cols += [padv(anL_s * sp(jnp.asarray(raw["wzL"], jnp.float32)).reshape(-1) / dimh)]
    cols += [jnp.zeros((dimh_p,), jnp.float32).at[0].set(anL_s * anL_b)]
    vec_slab = jnp.stack(cols, axis=1)
    assert vec_slab.shape == (dimh_p, n_cols)

    # --- slab 3: all hidden-block PosLinear matrices (softplus + 1/dimh folded) ------
    # Padded rows AND columns are zero so padded activation rows never contaminate
    # real rows when dimh is not a multiple of 8.
    wz_slab = jnp.zeros((2 * n_hidden * dimh_p, dimh_p), jnp.float32)
    for i, h in enumerate(raw["hidden"]):
        r1 = (2 * i) * dimh_p
        r2 = (2 * i + 1) * dimh_p
        wz_slab = wz_slab.at[r1:r1 + dimh, 0:dimh].set(
            sp(jnp.asarray(h["A1"], jnp.float32)) / dimh)
        wz_slab = wz_slab.at[r2:r2 + dimh, 0:dimh].set(
            sp(jnp.asarray(h["A2"], jnp.float32)) / dimh)

    return (wx_all, vec_slab, wz_slab)


def reference_forward(x, raw, dimh, symm_act_first=False):
    """Pure-JAX reference mirroring ResICNN2.forward (HIGHEST matmul precision)."""
    sp = jax.nn.softplus
    hp = jax.lax.Precision.HIGHEST
    h = jnp.dot(x, raw["wz0"].T, precision=hp) + raw["bz0"]
    h = (h + raw["an0_b"]) * jnp.exp(raw["an0_logs"])
    z = sp(h) - 0.5 * h if symm_act_first else sp(h)
    for blk in raw["hidden"]:
        u = jnp.dot(z, sp(blk["A1"]).T, precision=hp) / dimh          # PosLinear, no bias
        u = sp((u + blk["ab_in"]) * jnp.exp(blk["alogs_in"]))
        u = (jnp.dot(u, sp(blk["A2"]).T, precision=hp) + blk["b2"]) / dimh
        r = u + z + jnp.dot(x, blk["Wx"].T, precision=hp)
        z = sp((r + blk["ab"]) * jnp.exp(blk["alogs"]))
    o = jnp.dot(z, sp(raw["wzL"]).T, precision=hp) / dimh \
        + jnp.dot(x, raw["wxL"].T, precision=hp)
    return (o + raw["anL_b"]) * jnp.exp(raw["anL_logs"])


if __name__ == "__main__":
    key = jax.random.PRNGKey(0)
    kx, kp = jax.random.split(key)

    # Module defaults: dim=2, dimh=16, num_hidden_layers=2; small batch.
    B, dim, dimh, L = 2, 2, 16, 2
    x = jax.random.normal(kx, (B, dim), dtype=jnp.float32)

    raw = init_raw_params(kp, dim, dimh, L)
    kparams = prepare_kernel_params(raw, dim, dimh)

    forward = make_res_icnn2_forward(dim, dimh, L)
    out = jax.block_until_ready(forward(x, kparams))

    assert out.shape == (B, 1), out.shape
    assert bool(jnp.all(jnp.isfinite(out)))

    # Tolerance absorbs the MXU f32 pass decomposition while still catching structural
    # errors (missing gain / wrong actnorm order / missing residual / bad slab offsets).
    ref = reference_forward(x, raw, dimh)
    assert jnp.allclose(out, ref, rtol=2e-2, atol=2e-3), (out, ref)

    # Also exercise the large-batch path: 2 balanced lane-dense tiles, grid=(2,)
    # (the configuration that shards across both TensorCores on v7x).
    B2 = 4096
    x2 = jax.random.normal(jax.random.PRNGKey(1), (B2, dim), dtype=jnp.float32)
    out2 = jax.block_until_ready(forward(x2, kparams))
    assert out2.shape == (B2, 1)
    assert bool(jnp.all(jnp.isfinite(out2)))
    ref2 = reference_forward(x2, raw, dimh)
    max_err = float(jnp.max(jnp.abs(out2 - ref2)))
    assert max_err < 5e-2, max_err

    print("KERNEL_OK")
</pallas_src>

<mosaic_0001>
module attributes {stable_mosaic.version = 11 : i64} {
  func.func @kernel(%arg0: i32, %arg1: memref<2x128xf32, #tpu.memory_space<vmem>>, %arg2: memref<40x2xf32, #tpu.memory_space<vmem>>, %arg3: memref<16x10xf32, #tpu.memory_space<vmem>>, %arg4: memref<32x16xf32, #tpu.memory_space<vmem>>, %arg5: memref<1x128xf32, #tpu.memory_space<vmem>>) attributes {dimension_semantics = [#tpu.dimension_semantics<parallel>], iteration_bounds = array<i64: 1>, scalar_prefetch = 0 : i64, scratch_operands = 0 : i64, tpu.core_type = #tpu.core_type<tc>, window_params = [{transform_indices = @transform_0, window_bounds = array<i64: 2, 128>}, {pipeline_mode = #tpu.pipeline_mode<synchronous>, transform_indices = @transform_1, window_bounds = array<i64: 40, 2>}, {pipeline_mode = #tpu.pipeline_mode<synchronous>, transform_indices = @transform_2, window_bounds = array<i64: 16, 10>}, {pipeline_mode = #tpu.pipeline_mode<synchronous>, transform_indices = @transform_3, window_bounds = array<i64: 32, 16>}, {transform_indices = @transform_4, window_bounds = array<i64: 1, 128>}]} {
    %c0 = arith.constant 0 : index
    %c0_0 = arith.constant 0 : index
    %0 = vector.load %arg1[%c0, %c0_0] : memref<2x128xf32, #tpu.memory_space<vmem>>, vector<2x128xf32>
    %c0_1 = arith.constant 0 : index
    %c0_2 = arith.constant 0 : index
    %1 = vector.load %arg2[%c0_1, %c0_2] : memref<40x2xf32, #tpu.memory_space<vmem>>, vector<40x2xf32>
    %c0_3 = arith.constant 0 : index
    %c0_4 = arith.constant 0 : index
    %2 = vector.load %arg3[%c0_3, %c0_4] : memref<16x10xf32, #tpu.memory_space<vmem>>, vector<16x10xf32>
    %c0_5 = arith.constant 0 : index
    %c0_6 = arith.constant 0 : index
    %3 = vector.load %arg4[%c0_5, %c0_6] : memref<32x16xf32, #tpu.memory_space<vmem>>, vector<32x16xf32>
    %4 = vector.extract_strided_slice %1 {offsets = [0, 0], sizes = [40, 1], strides = [1, 1]} : vector<40x2xf32> to vector<40x1xf32>
    %5 = vector.extract_strided_slice %0 {offsets = [0, 0], sizes = [1, 128], strides = [1, 1]} : vector<2x128xf32> to vector<1x128xf32>
    %6 = vector.broadcast %4 : vector<40x1xf32> to vector<40x128xf32>
    %7 = vector.broadcast %5 : vector<1x128xf32> to vector<40x128xf32>
    %8 = arith.mulf %6, %7 : vector<40x128xf32>
    %9 = vector.extract_strided_slice %1 {offsets = [0, 1], sizes = [40, 1], strides = [1, 1]} : vector<40x2xf32> to vector<40x1xf32>
    %10 = vector.extract_strided_slice %0 {offsets = [1, 0], sizes = [1, 128], strides = [1, 1]} : vector<2x128xf32> to vector<1x128xf32>
    %11 = vector.broadcast %9 : vector<40x1xf32> to vector<40x128xf32>
    %12 = vector.broadcast %10 : vector<1x128xf32> to vector<40x128xf32>
    %13 = arith.mulf %11, %12 : vector<40x128xf32>
    %14 = arith.addf %8, %13 : vector<40x128xf32>
    %15 = vector.extract_strided_slice %14 {offsets = [0, 0], sizes = [16, 128], strides = [1, 1]} : vector<40x128xf32> to vector<16x128xf32>
    %16 = vector.extract_strided_slice %2 {offsets = [0, 0], sizes = [16, 1], strides = [1, 1]} : vector<16x10xf32> to vector<16x1xf32>
    %17 = vector.broadcast %16 : vector<16x1xf32> to vector<16x128xf32>
    %18 = arith.addf %15, %17 : vector<16x128xf32>
    %19 = vector.extract_strided_slice %2 {offsets = [0, 2], sizes = [16, 1], strides = [1, 1]} : vector<16x10xf32> to vector<16x1xf32>
    %20 = vector.broadcast %19 : vector<16x1xf32> to vector<16x128xf32>
    %21 = arith.addf %18, %20 : vector<16x128xf32>
    %22 = vector.extract_strided_slice %2 {offsets = [0, 1], sizes = [16, 1], strides = [1, 1]} : vector<16x10xf32> to vector<16x1xf32>
    %23 = vector.broadcast %22 : vector<16x1xf32> to vector<16x128xf32>
    %24 = arith.mulf %21, %23 : vector<16x128xf32>
    %25 = math.absf %24 : vector<16x128xf32>
    %cst = arith.constant 0.000000e+00 : f32
    %26 = vector.broadcast %cst : f32 to vector<16x128xf32>
    %27 = arith.subf %26, %25 : vector<16x128xf32>
    %28 = math.exp %27 : vector<16x128xf32>
    %cst_7 = arith.constant 0.000000e+00 : f32
    %29 = vector.broadcast %cst_7 : f32 to vector<16x128xf32>
    %30 = arith.maximumf %24, %29 : vector<16x128xf32>
    %cst_8 = arith.constant -1.500000e+01 : f32
    %31 = vector.broadcast %cst_8 : f32 to vector<16x128xf32>
    %32 = arith.cmpf olt, %24, %31 : vector<16x128xf32>
    %cst_9 = arith.constant 1.000000e+00 : f32
    %33 = vector.broadcast %cst_9 : f32 to vector<16x128xf32>
    %34 = arith.addf %33, %28 : vector<16x128xf32>
    %35 = math.log %34 : vector<16x128xf32>
    %36 = arith.select %32, %28, %35 : vector<16x128xi1>, vector<16x128xf32>
    %37 = arith.addf %30, %36 : vector<16x128xf32>
    %38 = vector.extract_strided_slice %3 {offsets = [0, 0], sizes = [16, 16], strides = [1, 1]} : vector<32x16xf32> to vector<16x16xf32>
    %39 = vector.extract_strided_slice %3 {offsets = [16, 0], sizes = [16, 16], strides = [1, 1]} : vector<32x16xf32> to vector<16x16xf32>
    %cst_10 = arith.constant dense<0.000000e+00> : vector<16x128xf32>
    %40 = tpu.matmul %38, %37, %cst_10 {dimension_numbers = #tpu.dot_dimension_numbers<[1], [0], [0], [1], [0, 0, 1, 1], [], []>} : vector<16x16xf32>, vector<16x128xf32>, vector<16x128xf32> -> vector<16x128xf32>
    %41 = vector.extract_strided_slice %2 {offsets = [0, 4], sizes = [16, 1], strides = [1, 1]} : vector<16x10xf32> to vector<16x1xf32>
    %42 = vector.broadcast %41 : vector<16x1xf32> to vector<16x128xf32>
    %43 = arith.addf %40, %42 : vector<16x128xf32>
    %44 = vector.extract_strided_slice %2 {offsets = [0, 3], sizes = [16, 1], strides = [1, 1]} : vector<16x10xf32> to vector<16x1xf32>
    %45 = vector.broadcast %44 : vector<16x1xf32> to vector<16x128xf32>
    %46 = arith.mulf %43, %45 : vector<16x128xf32>
    %47 = math.absf %46 : vector<16x128xf32>
    %cst_11 = arith.constant 0.000000e+00 : f32
    %48 = vector.broadcast %cst_11 : f32 to vector<16x128xf32>
    %49 = arith.subf %48, %47 : vector<16x128xf32>
    %50 = math.exp %49 : vector<16x128xf32>
    %cst_12 = arith.constant 0.000000e+00 : f32
    %51 = vector.broadcast %cst_12 : f32 to vector<16x128xf32>
    %52 = arith.maximumf %46, %51 : vector<16x128xf32>
    %cst_13 = arith.constant -1.500000e+01 : f32
    %53 = vector.broadcast %cst_13 : f32 to vector<16x128xf32>
    %54 = arith.cmpf olt, %46, %53 : vector<16x128xf32>
    %cst_14 = arith.constant 1.000000e+00 : f32
    %55 = vector.broadcast %cst_14 : f32 to vector<16x128xf32>
    %56 = arith.addf %55, %50 : vector<16x128xf32>
    %57 = math.log %56 : vector<16x128xf32>
    %58 = arith.select %54, %50, %57 : vector<16x128xi1>, vector<16x128xf32>
    %59 = arith.addf %52, %58 : vector<16x128xf32>
    %cst_15 = arith.constant dense<0.000000e+00> : vector<16x128xf32>
    %60 = tpu.matmul %39, %59, %cst_15 {dimension_numbers = #tpu.dot_dimension_numbers<[1], [0], [0], [1], [0, 0, 1, 1], [], []>} : vector<16x16xf32>, vector<16x128xf32>, vector<16x128xf32> -> vector<16x128xf32>
    %61 = vector.extract_strided_slice %2 {offsets = [0, 5], sizes = [16, 1], strides = [1, 1]} : vector<16x10xf32> to vector<16x1xf32>
    %62 = vector.broadcast %61 : vector<16x1xf32> to vector<16x128xf32>
    %63 = arith.addf %60, %62 : vector<16x128xf32>
    %64 = arith.addf %63, %37 : vector<16x128xf32>
    %65 = vector.extract_strided_slice %14 {offsets = [16, 0], sizes = [16, 128], strides = [1, 1]} : vector<40x128xf32> to vector<16x128xf32>
    %66 = arith.addf %64, %65 : vector<16x128xf32>
    %67 = vector.extract_strided_slice %2 {offsets = [0, 7], sizes = [16, 1], strides = [1, 1]} : vector<16x10xf32> to vector<16x1xf32>
    %68 = vector.broadcast %67 : vector<16x1xf32> to vector<16x128xf32>
    %69 = arith.addf %66, %68 : vector<16x128xf32>
    %70 = vector.extract_strided_slice %2 {offsets = [0, 6], sizes = [16, 1], strides = [1, 1]} : vector<16x10xf32> to vector<16x1xf32>
    %71 = vector.broadcast %70 : vector<16x1xf32> to vector<16x128xf32>
    %72 = arith.mulf %69, %71 : vector<16x128xf32>
    %73 = math.absf %72 : vector<16x128xf32>
    %cst_16 = arith.constant 0.000000e+00 : f32
    %74 = vector.broadcast %cst_16 : f32 to vector<16x128xf32>
    %75 = arith.subf %74, %73 : vector<16x128xf32>
    %76 = math.exp %75 : vector<16x128xf32>
    %cst_17 = arith.constant 0.000000e+00 : f32
    %77 = vector.broadcast %cst_17 : f32 to vector<16x128xf32>
    %78 = arith.maximumf %72, %77 : vector<16x128xf32>
    %cst_18 = arith.constant -1.500000e+01 : f32
    %79 = vector.broadcast %cst_18 : f32 to vector<16x128xf32>
    %80 = arith.cmpf olt, %72, %79 : vector<16x128xf32>
    %cst_19 = arith.constant 1.000000e+00 : f32
    %81 = vector.broadcast %cst_19 : f32 to vector<16x128xf32>
    %82 = arith.addf %81, %76 : vector<16x128xf32>
    %83 = math.log %82 : vector<16x128xf32>
    %84 = arith.select %80, %76, %83 : vector<16x128xi1>, vector<16x128xf32>
    %85 = arith.addf %78, %84 : vector<16x128xf32>
    %86 = vector.extract_strided_slice %2 {offsets = [0, 8], sizes = [16, 1], strides = [1, 1]} : vector<16x10xf32> to vector<16x1xf32>
    %87 = vector.broadcast %86 : vector<16x1xf32> to vector<16x128xf32>
    %88 = arith.mulf %87, %85 : vector<16x128xf32>
    %cst_20 = arith.constant dense<0.000000e+00> : vector<128xf32>
    %89 = vector.multi_reduction <add>, %88, %cst_20 [0] : vector<16x128xf32> to vector<128xf32>
    %90 = vector.shape_cast %89 : vector<128xf32> to vector<1x128xf32>
    %91 = vector.extract_strided_slice %14 {offsets = [32, 0], sizes = [1, 128], strides = [1, 1]} : vector<40x128xf32> to vector<1x128xf32>
    %92 = arith.addf %90, %91 : vector<1x128xf32>
    %93 = vector.extract_strided_slice %2 {offsets = [0, 9], sizes = [1, 1], strides = [1, 1]} : vector<16x10xf32> to vector<1x1xf32>
    %94 = vector.broadcast %93 : vector<1x1xf32> to vector<1x128xf32>
    %95 = arith.addf %92, %94 : vector<1x128xf32>
    %c0_21 = arith.constant 0 : index
    %c0_22 = arith.constant 0 : index
    %96 = vector.load %arg5[%c0_21, %c0_22] : memref<1x128xf32, #tpu.memory_space<vmem>>, vector<1x128xf32>
    tpu.vector_store %arg5[%c0_21, %c0_22], %95 {strides = array<i32>} : memref<1x128xf32, #tpu.memory_space<vmem>>, vector<1x128xf32>,
    return
  }
  func.func @transform_0(%arg0: i32) -> (i32, i32) {
    %c0_i32 = arith.constant 0 : i32
    %c0_i32_0 = arith.constant 0 : i32
    return %c0_i32, %arg0 : i32, i32
  }
  func.func @transform_1(%arg0: i32) -> (i32, i32) {
    %c0_i32 = arith.constant 0 : i32
    %c0_i32_0 = arith.constant 0 : i32
    %c0_i32_1 = arith.constant 0 : i32
    return %c0_i32, %c0_i32_0 : i32, i32
  }
  func.func @transform_2(%arg0: i32) -> (i32, i32) {
    %c0_i32 = arith.constant 0 : i32
    %c0_i32_0 = arith.constant 0 : i32
    %c0_i32_1 = arith.constant 0 : i32
    return %c0_i32, %c0_i32_0 : i32, i32
  }
  func.func @transform_3(%arg0: i32) -> (i32, i32) {
    %c0_i32 = arith.constant 0 : i32
    %c0_i32_0 = arith.constant 0 : i32
    %c0_i32_1 = arith.constant 0 : i32
    return %c0_i32, %c0_i32_0 : i32, i32
  }
  func.func @transform_4(%arg0: i32) -> (i32, i32) {
    %c0_i32 = arith.constant 0 : i32
    %c0_i32_0 = arith.constant 0 : i32
    return %c0_i32, %arg0 : i32, i32
  }
}

</mosaic_0001>

<bundles_post_ra>
// kernel: tpu_custom_call.1
= control target key start
LH: loop header
LB: loop body
LE: loop exit
PB: predicated region body
PF: predicated region fallthrough
CT: control target
= control target key end

     0   :  { %v564_v1 = vmov 1   ;;  %v565_v2 = vmov 0   ;;  %s707_s0 = inlined_call_operand.vmem [shape: f32[2,128], index: 0, kind: input, shape index: {}]   ;;  %s708_s1 = inlined_call_operand.vmem [shape: f32[40,2], index: 1, kind: input, shape index: {}]   ;;  %s709_s2 = inlined_call_operand.vmem [shape: f32[16,10], index: 2, kind: input, shape index: {}]   ;;  %s710_s3 = inlined_call_operand.vmem [shape: f32[32,16], index: 3, kind: input, shape index: {}]   ;;  %s711_s4 = inlined_call_operand.hbm [shape: f32[1,128], index: 4, kind: output, shape index: {}]  }
   0x1   :  { %v19_v0 = vld [vmem:[%s708_s1] sm:$0xff]  ;;  %493 = vset.pattern.permute.xlu1 %v564_v1  ;;  %492 = vset.pattern.permute.xlu0 %v565_v2 }
   0x2   :  { %9 = vsyncpa [#allocation3], 0  ;;  %65 = vperm.xlu1 %493, %v19_v0   ;;  %32 = vperm.xlu0 %492, %v19_v0   ;;  %v20_v3 = vld [vmem:[%s708_s1 + $0x8] sm:$0xff]  ;;  %v611_v4 = vld [vmem:[%s709_s2] sm:$0xff]  ;;  %v566_v6 = vmov 2   ;;  %vm160_vm0 = vcmask 130048   ;;  %v55_v10 = vlaneseq }
   0x3   :  { %v616_v5 = vld [vmem:[%s709_s2 + $0x8] sm:$0xff]  ;;  %v26_v7 = vld [vmem:[%s710_s3] sm:$0xff]  ;;  %v567_v8 = vmov 4   ;;  %v568_v9 = vmov 3   ;;  %v28_v61 = vld [vmem:[%s710_s3 + $0x10] sm:$0xff]  ;;  %v569_v0 = vmov 5  }
   0x4   :  { %463 = vmatprep.mubr.msk.f32.mxu0 %vm160_vm0, %v26_v7  ;;  %v56_v11 = vshrl.u32 %v55_v10, 7  ;;  %v18_v16 = vld [vmem:[%s707_s0] sm:$0x3]  ;;  %v27_v60 = vld [vmem:[%s710_s3 + $0x8] sm:$0xff]  ;;  %470 = vmatprep.mubr.msk.f32.mxu1 %vm160_vm0, %v28_v61  ;;  %v21_v62 = vld [vmem:[%s708_s1 + $0x10] sm:$0xff] }
   0x5   :  { %v22_v63 = vld [vmem:[%s708_s1 + $0x18] sm:$0xff]  ;;  %v23_v7 = vld [vmem:[%s708_s1 + $0x20] sm:$0xff] }
   0x6   :  { %69 = vperm.xlu1 %493, %v20_v3   ;;  %37 = vperm.xlu0 %492, %v20_v3   ;;  %v86_v14 = vsub.s32 1, %v56_v11  ;;  %v57_v15 = vsub.s32 0, %v56_v11  ;;  %v570_v3 = vmov 7  }
   0x8   :  { %v640_v19 = vrot.slane %v18_v16, %v86_v14  ;;  %v642_v20 = vrot.slane %v18_v16, %v57_v15 }
   0xa   :  { %494 = vset.pattern.permute.xlu1 %v565_v2  ;;  %100 = vperm.xlu0 %492, %v611_v4  }
   0xb   :  { %105 = vperm.xlu1 %494, %v616_v5  }
   0xe   :  { %495 = vset.pattern.permute.xlu0 %v566_v6 }
   0xf   :  { %496 = vset.pattern.permute.xlu1 %v566_v6  ;;  %111 = vperm.xlu0 %495, %v611_v4   ;;  %v571_v6 = vmov 8  }
  0x10   :  { %115 = vperm.xlu1 %496, %v616_v5  }
  0x13   :  { %498 = vset.pattern.permute.xlu0 %v564_v1 }
  0x14   :  { %497 = vset.pattern.permute.xlu1 %v564_v1  ;;  %125 = vperm.xlu0 %498, %v616_v5  }
  0x15   :  { %121 = vperm.xlu1 %497, %v611_v4  }
  0x18   :  { %500 = vset.pattern.permute.xlu0 %v568_v9 }
  0x19   :  { %499 = vset.pattern.permute.xlu1 %v567_v8  ;;  %243 = vperm.xlu0 %500, %v611_v4   ;;  %v572_v8 = vmov 6  }
  0x1a   :  { %153 = vperm.xlu1 %499, %v611_v4  }
  0x1d   :  { %503 = vset.pattern.permute.xlu0 %v565_v2 }
  0x1e   :  { %157 = vperm.xlu1 %499, %v616_v5   ;;  %47 = vperm.xlu0 %503, %v22_v63  }
  0x22   :  { %501 = vset.pattern.permute.xlu1 %v568_v9  ;;  %505 = vset.pattern.permute.xlu0 %v569_v0  ;;  %v573_v9 = vmov 9  }
  0x23   :  { %247 = vperm.xlu1 %501, %v616_v5   ;;  %275 = vperm.xlu0 %505, %v611_v4  }
  0x27   :  { %502 = vset.pattern.permute.xlu1 %v565_v2  ;;  %508 = vset.pattern.permute.xlu0 %v570_v3 }
  0x28   :  { %42 = vperm.xlu1 %502, %v21_v62   ;;  %372 = vperm.xlu0 %508, %v616_v5  }
  0x2c   :  { %504 = vset.pattern.permute.xlu1 %v564_v1  ;;  %510 = vset.pattern.permute.xlu0 %v571_v6 }
  0x2d   :  { %73 = vperm.xlu1 %504, %v21_v62   ;;  %410 = vperm.xlu0 %510, %v611_v4  }
  0x31   :  { %77 = vperm.xlu1 %504, %v22_v63   ;;  %513 = vset.pattern.permute.xlu0 %v564_v1 }
  0x32   :  { %81 = vperm.xlu0 %513, %v23_v7  }
  0x35   :  { %506 = vset.pattern.permute.xlu1 %v569_v0 }
  0x36   :  { %279 = vperm.xlu1 %506, %v616_v5   ;;  %515 = vset.pattern.permute.xlu0 %v573_v9 }
  0x3a   :  { %507 = vset.pattern.permute.xlu1 %v570_v3 }
  0x3b   :  { %368 = vperm.xlu1 %507, %v611_v4  }
  0x3f   :  { %509 = vset.pattern.permute.xlu1 %v572_v8 }
  0x40   :  { %378 = vperm.xlu1 %509, %v611_v4  }
  0x44   :  { %382 = vperm.xlu1 %509, %v616_v5  }
  0x48   :  { %511 = vset.pattern.permute.xlu1 %v571_v6 }
  0x49   :  { %414 = vperm.xlu1 %511, %v616_v5  }
  0x4d   :  { %512 = vset.pattern.permute.xlu1 %v565_v2 }
  0x4e   :  { %52 = vperm.xlu1 %512, %v23_v7  }
  0x52   :  { %514 = vset.pattern.permute.xlu1 %v573_v9 }
  0x53   :  { %428 = vperm.xlu1 %514, %v611_v4  }
  0x81   :  { %v66_v12 = vpop.permute.xlu1 %65  ;;  %v33_v13 = vpop.permute.xlu0 %32 }
  0x82   :  { %v88_v25 = vmul.f32 %v640_v19, %v66_v12  ;;  %v59_v26 = vmul.f32 %v642_v20, %v33_v13 }
  0x84   :  { %v93_v29 = vadd.f32 %v88_v25, %v59_v26 }
  0x85   :  { %v70_v17 = vpop.permute.xlu1 %69  ;;  %v38_v18 = vpop.permute.xlu0 %37 }
  0x86   :  { %v89_v21 = vmul.f32 %v640_v19, %v70_v17  ;;  %v60_v22 = vmul.f32 %v642_v20, %v38_v18 }
  0x88   :  { %v94_v27 = vadd.f32 %v89_v21, %v60_v22 }
  0x89   :  { %v101_v23 = vpop.permute.xlu0 %100 }
  0x8a   :  { %v106_v24 = vpop.permute.xlu1 %105  ;;  %v108_v32 = vadd.f32 %v101_v23, %v93_v29 }
  0x8b   :  { %v109_v31 = vadd.f32 %v106_v24, %v94_v27 }
  0x8e   :  { %v112_v28 = vpop.permute.xlu0 %111 }
  0x8f   :  { %v116_v30 = vpop.permute.xlu1 %115  ;;  %v118_v34 = vadd.f32 %v112_v28, %v108_v32 }
  0x90   :  { %v119_v33 = vadd.f32 %v116_v30, %v109_v31 }
  0x93   :  { %v126_v35 = vpop.permute.xlu0 %125 }
  0x94   :  { %v129_v36 = vmul.f32 %v126_v35, %v119_v33  ;;  %v122_v37 = vpop.permute.xlu1 %121 }
  0x95   :  { %v128_v38 = vmul.f32 %v122_v37, %v118_v34 }
  0x96   :  { %v131_v39 = vand.u32 2147483647, %v129_v36  ;;  %v139_v52 = vmax.f32 %v129_v36, 0.0  ;;  %vm141_vm1 = vcmp.lt.f32.partialorder %v129_v36, -15.0 }
  0x97   :  { %v130_v40 = vand.u32 2147483647, %v128_v38  ;;  %v138_v54 = vmax.f32 %v128_v38, 0.0  ;;  %vm140_vm2 = vcmp.lt.f32.partialorder %v128_v38, -15.0 }
  0x98   :  { %v133_v41 = vsub.f32 0.0, %v131_v39  ;;  %v244_v15 = vpop.permute.xlu0 %243  ;;  %v29_v39 = vld [vmem:[%s710_s3 + $0x18] sm:$0xff]  ;;  %s574_s3 = smov [#allocation2]  }
  0x99   :  { %v132_v42 = vsub.f32 0.0, %v130_v40  ;;  %v154_v10 = vpop.permute.xlu1 %153  ;;  %s439_s10 = sshll.u32 %s574_s3, 4  ;;  %s440_s10 = int_to_ptr.vmem [resolvable:$true] %s439_s10 }
  0x9a   :  { %v136_v43 = vmul.f32 1.442695, %v133_v41  ;;  %s540_s11 = scalar_lea.vmem %s440_s10, 16  ;;  %s544_s12 = scalar_lea.vmem %s440_s10, 32 }
  0x9b   :  { %v134_v44 = vmul.f32 1.442695, %v132_v42  ;;  %p541_p0 = scmp.ne.s32.totalorder %s440_s10, %s540_s11  ;;  %p545_p1 = scmp.lt.s32.totalorder %s440_s10, %s440_s10 }
  0x9c   :  { %516 = vpow2.f32 %v136_v43  ;;  %p546_p2 = scmp.lt.s32.totalorder %s544_s12, %s540_s11 }
  0x9d   :  { %518 = vpow2.f32 %v134_v44  ;;  %v158_v1 = vpop.permute.xlu1 %157  ;;  %v48_v44 = vpop.permute.xlu0 %47 }
  0x9e   :  { %p547_p3 = por %p546_p2, %p545_p1 }
  0xa0   :  { %p548_p4 = pnand %p547_p3, %p541_p0 }
  0xa2   :  { %v248_v12 = vpop.permute.xlu1 %247 }
  0xa6   :  { %v517_v45 = vpop.eup %516 }
  0xa7   :  { %v519_v46 = vpop.eup %518  ;;  %v143_v47 = vadd.f32 1.0, %v517_v45  ;;  %v43_v40 = vpop.permute.xlu1 %42 }
  0xa8   :  { %v142_v48 = vadd.f32 1.0, %v519_v46 }
  0xa9   :  { %520 = vlog2.f32 %v143_v47 }
  0xaa   :  { %522 = vlog2.f32 %v142_v48  ;;  %v62_v48 = vmul.f32 %v642_v20, %v48_v44 }
  0xac   :  { %v74_v41 = vpop.permute.xlu1 %73 }
  0xb0   :  { %v78_v42 = vpop.permute.xlu1 %77 }
  0xb1   :  { %v91_v47 = vmul.f32 %v640_v19, %v78_v42 }
  0xb3   :  { %v521_v49 = vpop.eup %520 }
  0xb4   :  { %v523_v50 = vpop.eup %522  ;;  %v147_v51 = vmul.f32 0.6931472, %v521_v49  ;;  %v61_v49 = vmul.f32 %v642_v20, %v43_v40 }
  0xb5   :  { %v145_v53 = vmul.f32 0.6931472, %v523_v50  ;;  %v280_v43 = vpop.permute.xlu1 %279  ;;  %v90_v50 = vmul.f32 %v640_v19, %v74_v41 }
  0xb6   :  { %v149_v55 = vsel %vm141_vm1, %v517_v45, %v147_v51 }
  0xb7   :  { %v148_v56 = vsel %vm140_vm2, %v519_v46, %v145_v53  ;;  %v648_v57 = vadd.f32 %v149_v55, %v139_v52  ;;  %v276_v46 = vpop.permute.xlu0 %275 }
  0xb8   :  { %v650_v58 = vadd.f32 %v148_v56, %v138_v54  ;;  %v96_v56 = vadd.f32 %v91_v47, %v62_v48 }
  0xba   :  { %v473_v59 = vpack.c.bf16 %v648_v57, %v650_v58  ;;  %v369_v45 = vpop.permute.xlu1 %368 }
  0xbb   :  { %v373_v62 = vpop.permute.xlu0 %372 }
  0xbc   :  { %474 = vmatprep.subr.bf16.mxu0 %v473_v59 }
  0xbd   :  { %476 = vmatpush3.bf16.msra.mxu0 %v473_v59 }
  0xbf   :  { %v379_v54 = vpop.permute.xlu1 %378 }
  0xc0   :  { %464 = vmatmul.mubr.msk.f32.vlgmr.msra.gmra.mrb[0].mxu0 %vm160_vm0, %v27_v60  ;;  %v95_v60 = vadd.f32 %v90_v50, %v61_v49 }
  0xc3   :  { %v383_v7 = vpop.permute.xlu1 %382 }
 0x193   :  { %v465_v11 = vpop.f32.mrb[0].mxu0 }
 0x194   :  { %v239_v13 = vadd.f32 %v465_v11, %v158_v1  ;;  %v233_v14 = vpop.f32.mrb[1].mxu0 }
 0x195   :  { %v234_v16 = vadd.f32 %v233_v14, %v154_v10 }
 0x196   :  { %v251_v17 = vmul.f32 %v248_v12, %v239_v13 }
 0x197   :  { %v250_v18 = vmul.f32 %v244_v15, %v234_v16 }
 0x198   :  { %v253_v21 = vand.u32 2147483647, %v251_v17  ;;  %v261_v31 = vmax.f32 %v251_v17, 0.0  ;;  %vm263_vm3 = vcmp.lt.f32.partialorder %v251_v17, -15.0 }
 0x199   :  { %v252_v22 = vand.u32 2147483647, %v250_v18  ;;  %v260_v33 = vmax.f32 %v250_v18, 0.0  ;;  %vm262_vm4 = vcmp.lt.f32.partialorder %v250_v18, -15.0 }
 0x19a   :  { %v255_v23 = vsub.f32 0.0, %v253_v21 }
 0x19b   :  { %v254_v5 = vsub.f32 0.0, %v252_v22 }
 0x19c   :  { %v258_v24 = vmul.f32 1.442695, %v255_v23 }
 0x19d   :  { %v256_v2 = vmul.f32 1.442695, %v254_v5  ;;  %v415_v5 = vpop.permute.xlu1 %414 }
 0x19e   :  { %524 = vpow2.f32 %v258_v24 }
 0x19f   :  { %526 = vpow2.f32 %v256_v2 }
 0x1a8   :  { %v525_v25 = vpop.eup %524 }
 0x1a9   :  { %v527_v4 = vpop.eup %526  ;;  %v265_v26 = vadd.f32 1.0, %v525_v25 }
 0x1aa   :  { %v264_v27 = vadd.f32 1.0, %v527_v4 }
 0x1ab   :  { %528 = vlog2.f32 %v265_v26 }
 0x1ac   :  { %530 = vlog2.f32 %v264_v27 }
 0x1b5   :  { %v529_v28 = vpop.eup %528 }
 0x1b6   :  { %v531_v29 = vpop.eup %530  ;;  %v269_v30 = vmul.f32 0.6931472, %v529_v28 }
 0x1b7   :  { %v267_v32 = vmul.f32 0.6931472, %v531_v29 }
 0x1b8   :  { %v271_v34 = vsel %vm263_vm3, %v525_v25, %v269_v30 }
 0x1b9   :  { %v270_v35 = vsel %vm262_vm4, %v527_v4, %v267_v32  ;;  %v273_v36 = vadd.f32 %v271_v34, %v261_v31  ;;  %v411_v4 = vpop.permute.xlu0 %410  ;;  %v53_v32 = vpop.permute.xlu1 %52 }
 0x1ba   :  { %v272_v37 = vadd.f32 %v270_v35, %v260_v33 }
 0x1bc   :  { %v477_v38 = vpack.c.bf16 %v273_v36, %v272_v37  ;;  %v63_v36 = vmul.f32 %v642_v20, %v53_v32 }
 0x1bd   :  { %v82_v33 = vpop.permute.xlu0 %81  ;;  %v429_v42 = vpop.permute.xlu1 %428 }
 0x1be   :  { %478 = vmatprep.subr.bf16.mxu1 %v477_v38  ;;  %v92_v37 = vmul.f32 %v640_v19, %v82_v33 }
 0x1bf   :  { %480 = vmatpush3.bf16.msra.mxu1 %v477_v38 }
 0x1c2   :  { %471 = vmatmul.mubr.msk.f32.vlgmr.msra.gmra.mrb[0].mxu1 %vm160_vm0, %v29_v39  ;;  %v97_v39 = vadd.f32 %v92_v37, %v63_v36 }
 0x295   :  { %v472_v51 = vpop.f32.mrb[0].mxu1 }
 0x296   :  { %v360_v52 = vadd.f32 %v472_v51, %v280_v43  ;;  %v354_v53 = vpop.f32.mrb[1].mxu1 }
 0x297   :  { %v355_v55 = vadd.f32 %v354_v53, %v276_v46 }
 0x298   :  { %v364_v59 = vadd.f32 %v360_v52, %v648_v57 }
 0x299   :  { %v363_v61 = vadd.f32 %v355_v55, %v650_v58 }
 0x29a   :  { %v366_v63 = vadd.f32 %v364_v59, %v96_v56 }
 0x29b   :  { %v365_v0 = vadd.f32 %v363_v61, %v95_v60 }
 0x29c   :  { %v376_v3 = vadd.f32 %v373_v62, %v366_v63 }
 0x29d   :  { %v375_v6 = vadd.f32 %v369_v45, %v365_v0 }
 0x29e   :  { %v386_v8 = vmul.f32 %v383_v7, %v376_v3 }
 0x29f   :  { %v385_v9 = vmul.f32 %v379_v54, %v375_v6 }
 0x2a0   :  { %v388_v10 = vand.u32 2147483647, %v386_v8  ;;  %v396_v22 = vmax.f32 %v386_v8, 0.0  ;;  %vm398_vm5 = vcmp.lt.f32.partialorder %v386_v8, -15.0 }
 0x2a1   :  { %v387_v1 = vand.u32 2147483647, %v385_v9  ;;  %v395_v2 = vmax.f32 %v385_v9, 0.0  ;;  %vm397_vm6 = vcmp.lt.f32.partialorder %v385_v9, -15.0 }
 0x2a2   :  { %v390_v11 = vsub.f32 0.0, %v388_v10 }
 0x2a3   :  { %v389_v12 = vsub.f32 0.0, %v387_v1 }
 0x2a4   :  { %v393_v13 = vmul.f32 1.442695, %v390_v11 }
 0x2a5   :  { %v391_v14 = vmul.f32 1.442695, %v389_v12 }
 0x2a6   :  { %532 = vpow2.f32 %v393_v13 }
 0x2a7   :  { %534 = vpow2.f32 %v391_v14 }
 0x2b0   :  { %v533_v57 = vpop.eup %532 }
 0x2b1   :  { %v535_v15 = vpop.eup %534  ;;  %v400_v16 = vadd.f32 1.0, %v533_v57 }
 0x2b2   :  { %v399_v58 = vadd.f32 1.0, %v535_v15 }
 0x2b3   :  { %536 = vlog2.f32 %v400_v16 }
 0x2b4   :  { %538 = vlog2.f32 %v399_v58 }
 0x2bd   :  { %v537_v17 = vpop.eup %536 }
 0x2be   :  { %v539_v18 = vpop.eup %538  ;;  %v404_v21 = vmul.f32 0.6931472, %v537_v17 }
 0x2bf   :  { %v402_v23 = vmul.f32 0.6931472, %v539_v18 }
 0x2c0   :  { %v406_v24 = vsel %vm398_vm5, %v533_v57, %v404_v21 }
 0x2c1   :  { %v408_v25 = vadd.f32 %v406_v24, %v396_v22  ;;  %v405_v26 = vsel %vm397_vm6, %v535_v15, %v402_v23 }
 0x2c2   :  { %v407_v27 = vadd.f32 %v405_v26, %v395_v2 }
 0x2c3   :  { %v418_v28 = vmul.f32 %v415_v5, %v408_v25 }
 0x2c4   :  { %v417_v29 = vmul.f32 %v411_v4, %v407_v27 }
 0x2c6   :  { %v419_v30 = vadd.f32 %v418_v28, %v417_v29 }
 0x2c8   :  { %v420_v31 = vrot.slane %v419_v30, 4 }
 0x2ca   :  { %v421_v34 = vadd.f32 %v420_v31, %v419_v30 }
 0x2cc   :  { %v422_v35 = vrot.slane %v421_v34, 2 }
 0x2ce   :  { %v423_v38 = vadd.f32 %v422_v35, %v421_v34 }
 0x2d0   :  { %v424_v40 = vrot.slane %v423_v38, 1 }
 0x2d2   :  { %v425_v41 = vadd.f32 %v424_v40, %v423_v38 }
 0x2d4   :  { %v426_v43 = vadd.f32 %v425_v41, %v97_v39 }
 0x2d6   :  { %v431_v44 = vadd.f32 %v429_v42, %v426_v43 }
 0x2d8   :  { %432 = vst [vmem:[#allocation2] sm:$0x1] %v431_v44 }
 0x2d9   :  { %551 = shalt.err (!%p548_p4)
}
 0x2da   :  { %s552_s15 = scalar_lea.hbm %s711_s4, 16 }
 0x2db   :  { %p553_p5 = scmp.ne.s32.totalorder %s711_s4, %s552_s15  ;;  %p556_p6 = scmp.lt.u32.totalorder %s552_s15, %s711_s4 }
 0x2dd   :  { %p558_p7 = pnand %p556_p6, %p553_p5 }
 0x2df   :  { %561 = shalt.err (!%p558_p7)
}
 0x2e0   :  { %442 = dma.vmem_to_hbm [thread:$0]  %s440_s10, 16, %s711_s4, [#allocation3]  }
 0x2e1   :  { %562 = dma.done.wait [#allocation3], 16  }
 0x2e2   :  { %563 = vsyncadd [#allocation3], 4294967280 }
 0x2e3   :  { %446 = vsyncpa [#allocation3], 1 }

</bundles_post_ra>
